<compile_context>
chip_gen: v6e
topology: v6e:2x2x1
jax: 0.10.0
libtpu: 0.0.40
codegen_flags: <defaults>
</compile_context>

<pallas_src>
import numpy as np
import jax
import jax.numpy as jnp
from jax import lax
from jax.experimental import pallas as pl
from jax.experimental.pallas import tpu as pltpu

# Module-level Laplacian weight from the reference code.
LAP_WEIGHT = np.array([[-1, -1, -1], [-1, 4, -1], [-1, -1, -1]], dtype=np.float32)

_MIB = 1 << 20


def _round_up(n, m):
    return -(-int(n) // m) * m


# -----------------------------------------------------------------------------
# Tiling / VMEM budgeting
# -----------------------------------------------------------------------------
def _pick_row_tile(H, bytes_per_row, BC, row_tile=None, budget_bytes=32 * _MIB):
    """Pick the row tile T_H (either H itself or a multiple of 8) and
    n_h = cdiv(H, T_H).  `budget_bytes` bounds the double-buffered main-stream
    working set so the explicit vmem limit stays well under v7x's 64 MiB/TC."""
    if row_tile is None:
        max_rows = max(8, budget_bytes // max(int(bytes_per_row), 1))
        if H <= max_rows:
            row_tile = H
            # Megacore balance (v7x, 2 TCs): keep >= ~4 grid steps when B*C is tiny.
            if BC < 4 and H >= 16:
                row_tile = -(-H // (-(-4 // BC)))
        else:
            row_tile = max_rows
    T_H = min(int(row_tile), H)
    if T_H < H:
        T_H = max(8, (T_H // 8) * 8)       # tiles must be sublane (8) aligned
    if H < 8:
        T_H = H                            # too small to tile
    n_h = -(-H // T_H)
    if n_h <= 1:
        T_H, n_h = H, 1
    return T_H, n_h


def _vmem_limit(T_H, W, stream_itemsizes, has_halo, x_itemsize):
    th = _round_up(max(T_H, 1), 8)
    wp = _round_up(max(W, 1), 128)
    total = 2 * th * wp * int(sum(stream_itemsizes))     # double-buffered main streams
    if has_halo:
        total += 2 * 2 * 8 * wp * int(x_itemsize)        # two 8-row halo streams
    total += 2 * 8 * 128 * 4                             # loss-partial block
    return int(max(total + max(total // 4, 2 * _MIB), 16 * _MIB))


# -----------------------------------------------------------------------------
# 3x3 stencil with taps baked in at trace time.  Zero padding / row halos are
# realized with static-slice + concat (no padded scratch, no pltpu.roll, so it
# is valid in interpret mode too).  For uniform-ring filters (incl. the
# Laplacian) the separable rewrite out = (c - r)*x + r*box3x3(x) is used.
# -----------------------------------------------------------------------------
def _make_stencil(weight3x3, H, ragged):
    w = np.asarray(weight3x3, dtype=np.float64)
    assert w.shape == (3, 3)
    center = float(w[1, 1])
    ring = float(w[0, 0])
    off = [float(w[i, j]) for i in range(3) for j in range(3) if (i, j) != (1, 1)]
    uniform_ring = all(abs(v - ring) < 1e-12 for v in off)

    def lane3(a, wl, wc, wr):
        """wl*a[:, j-1] + wc*a[:, j] + wr*a[:, j+1] with zero padding along W."""
        zc = jnp.zeros((a.shape[0], 1), a.dtype)
        res = a if wc == 1.0 else (wc * a if wc != 0.0 else jnp.zeros_like(a))
        if wl != 0.0:
            xl = jnp.concatenate([zc, a[:, :-1]], axis=1)
            res = res + (xl if wl == 1.0 else wl * xl)
        if wr != 0.0:
            xr = jnp.concatenate([a[:, 1:], zc], axis=1)
            res = res + (xr if wr == 1.0 else wr * xr)
        return res

    def vshift(a, up_row, dn_row, h):
        """Row neighbours with halo rows patched in; for a ragged last tile the
        below-neighbour is zeroed at the last valid image row."""
        T_H = a.shape[0]
        up = jnp.concatenate([up_row, a[:-1, :]], axis=0)
        dn = jnp.concatenate([a[1:, :], dn_row], axis=0)
        if ragged:
            row = lax.broadcasted_iota(jnp.int32, (T_H, 1), 0)
            dn = jnp.where(h * T_H + row >= H - 1, 0.0, dn)
        return up, dn

    def stencil(x, top, bot, h):
        if uniform_ring:
            hs_x = lane3(x, 1.0, 1.0, 1.0)
            hs_t = lane3(top, 1.0, 1.0, 1.0)
            hs_b = lane3(bot, 1.0, 1.0, 1.0)
            up, dn = vshift(hs_x, hs_t, hs_b, h)
            box = up + hs_x + dn
            return (center - ring) * x + ring * box
        x_up, x_dn = vshift(x, top, bot, h)
        acc = lane3(x_up, float(w[0, 0]), float(w[0, 1]), float(w[0, 2]))
        acc = acc + lane3(x, float(w[1, 0]), float(w[1, 1]), float(w[1, 2]))
        acc = acc + lane3(x_dn, float(w[2, 0]), float(w[2, 1]), float(w[2, 2]))
        return acc

    return stencil


# -----------------------------------------------------------------------------
# Kernels
# -----------------------------------------------------------------------------
def _make_conv_kernel(stencil, n_h, has_halo):
    def kernel(*refs):
        if has_halo:
            x_ref, top_ref, bot_ref, o_ref = refs
        else:
            x_ref, o_ref = refs
        h = pl.program_id(1)
        x = x_ref[...].astype(jnp.float32)
        if has_halo:
            top = jnp.where(h == 0, 0.0, top_ref[7:8, :].astype(jnp.float32))
            bot = jnp.where(h == n_h - 1, 0.0, bot_ref[0:1, :].astype(jnp.float32))
        else:
            top = jnp.zeros((1, x.shape[1]), jnp.float32)
            bot = top
        o_ref[...] = stencil(x, top, bot, h).astype(o_ref.dtype)

    return kernel


def _make_fused_kernel(stencil, H, n_h, ragged, write_filter, accumulate_h, has_halo):
    def kernel(*refs):
        if has_halo:
            x_ref, top_ref, bot_ref, tf_ref = refs[:4]
            rest = refs[4:]
        else:
            x_ref, tf_ref = refs[:2]
            rest = refs[2:]
        if write_filter:
            o_ref, p_ref = rest
        else:
            (p_ref,) = rest

        h = pl.program_id(1)
        x = x_ref[...].astype(jnp.float32)
        if has_halo:
            top = jnp.where(h == 0, 0.0, top_ref[7:8, :].astype(jnp.float32))
            bot = jnp.where(h == n_h - 1, 0.0, bot_ref[0:1, :].astype(jnp.float32))
        else:
            top = jnp.zeros((1, x.shape[1]), jnp.float32)
            bot = top

        out = stencil(x, top, bot, h)
        if write_filter:
            o_ref[...] = out.astype(o_ref.dtype)

        d = out - tf_ref[...].astype(jnp.float32)
        if ragged:
            # Padded rows of the (partial) last row tile must not pollute the loss.
            T_H = d.shape[0]
            row = lax.broadcasted_iota(jnp.int32, (T_H, 1), 0)
            d = jnp.where(h * T_H + row < H, d, 0.0)
        ss = jnp.sum(d * d)

        if accumulate_h:
            @pl.when(h == 0)
            def _():
                p_ref[...] = jnp.zeros_like(p_ref)
            p_ref[...] = p_ref[...] + jnp.broadcast_to(ss, p_ref.shape)
        else:
            p_ref[...] = jnp.broadcast_to(ss, p_ref.shape)

    return kernel


def _specs(H, W, T_H, n_h):
    main = pl.BlockSpec((None, T_H, W), lambda bc, h: (bc, h, 0))
    if n_h == 1:
        return main, None, None
    tb = T_H // 8
    nblk8 = -(-H // 8)
    # Sublane-aligned (8, W) halo blocks; clamped at the image border and zeroed
    # in-kernel (zero-padding semantics of conv2d padding=1).
    top = pl.BlockSpec((None, 8, W), lambda bc, h: (bc, jnp.maximum(h * tb - 1, 0), 0))
    bot = pl.BlockSpec((None, 8, W),
                       lambda bc, h: (bc, jnp.minimum((h + 1) * tb, nblk8 - 1), 0))
    return main, top, bot


# -----------------------------------------------------------------------------
# Wrappers
# -----------------------------------------------------------------------------
def lap_conv(x, weight3x3, row_tile=None):
    """Depthwise conv2d of x:(B,C,H,W) with one shared 3x3 filter, padding=1,
    groups=C (== F.conv2d(x, w.repeat(C,1,1,1), padding=1, groups=C))."""
    B, C, H, W = x.shape
    BC = B * C
    out_dtype = x.dtype if jnp.issubdtype(x.dtype, jnp.floating) else jnp.float32
    xr = x.reshape(BC, H, W)
    x_b = jnp.dtype(x.dtype).itemsize
    o_b = jnp.dtype(out_dtype).itemsize
    wp = _round_up(W, 128)
    T_H, n_h = _pick_row_tile(H, 2 * wp * (x_b + o_b), BC, row_tile)
    has_halo = n_h > 1
    ragged = (H % T_H) != 0

    stencil = _make_stencil(weight3x3, H, ragged)
    kernel = _make_conv_kernel(stencil, n_h, has_halo)
    main, top, bot = _specs(H, W, T_H, n_h)
    in_specs = [main, top, bot] if has_halo else [main]
    operands = (xr, xr, xr) if has_halo else (xr,)

    out = pl.pallas_call(
        kernel,
        out_shape=jax.ShapeDtypeStruct((BC, H, W), out_dtype),
        grid=(BC, n_h),
        in_specs=in_specs,
        out_specs=main,
        compiler_params=pltpu.CompilerParams(
            dimension_semantics=("parallel", "parallel"),
            vmem_limit_bytes=_vmem_limit(T_H, W, (x_b, o_b), has_halo, x_b)),
    )(*operands)
    return out.reshape(B, C, H, W)


def lap_conv_mse(x, target_filter, weight3x3, row_tile=None, write_filter=True):
    """Fused: syn_filter = depthwise3x3(x); loss = mean((syn_filter - target_filter)^2).
    write_filter=False computes the loss only (no (B,C,H,W) filter HBM writeback)."""
    B, C, H, W = x.shape
    assert target_filter.shape == (B, C, H, W)
    BC = B * C
    out_dtype = x.dtype if jnp.issubdtype(x.dtype, jnp.floating) else jnp.float32
    xr = x.reshape(BC, H, W)
    tfr = target_filter.reshape(BC, H, W)

    x_b = jnp.dtype(x.dtype).itemsize
    tf_b = jnp.dtype(target_filter.dtype).itemsize
    o_b = jnp.dtype(out_dtype).itemsize if write_filter else 0
    wp = _round_up(W, 128)
    T_H, n_h = _pick_row_tile(H, 2 * wp * (x_b + tf_b + o_b), BC, row_tile)
    has_halo = n_h > 1
    ragged = (H % T_H) != 0
    # Accumulate the squared-error partial in the VMEM-resident per-plane output
    # block across h ('arbitrary') when B*C gives enough megacore parallelism on
    # its own; otherwise keep both axes 'parallel' (v7x balance) with per-step
    # partial blocks.
    accumulate_h = has_halo and BC >= 8

    stencil = _make_stencil(weight3x3, H, ragged)
    kernel = _make_fused_kernel(stencil, H, n_h, ragged, write_filter,
                                accumulate_h, has_halo)
    main, top, bot = _specs(H, W, T_H, n_h)
    in_specs = [main, top, bot, main] if has_halo else [main, main]
    operands = (xr, xr, xr, tfr) if has_halo else (xr, tfr)

    out_shapes, out_specs = [], []
    if write_filter:
        out_shapes.append(jax.ShapeDtypeStruct((BC, H, W), out_dtype))
        out_specs.append(main)
    if accumulate_h:
        out_shapes.append(jax.ShapeDtypeStruct((BC, 8, 128), jnp.float32))
        out_specs.append(pl.BlockSpec((None, 8, 128), lambda bc, h: (bc, 0, 0)))
        dims = ("parallel", "arbitrary")
    else:
        out_shapes.append(jax.ShapeDtypeStruct((BC, n_h, 8, 128), jnp.float32))
        out_specs.append(pl.BlockSpec((None, None, 8, 128),
                                      lambda bc, h: (bc, h, 0, 0)))
        dims = ("parallel", "parallel")

    stream_b = (x_b, tf_b, o_b) if write_filter else (x_b, tf_b)
    results = pl.pallas_call(
        kernel,
        out_shape=tuple(out_shapes),
        grid=(BC, n_h),
        in_specs=in_specs,
        out_specs=tuple(out_specs),
        compiler_params=pltpu.CompilerParams(
            dimension_semantics=dims,
            vmem_limit_bytes=_vmem_limit(T_H, W, stream_b, has_halo, x_b)),
    )(*operands)

    if write_filter:
        filt, part = results
        filt = filt.reshape(B, C, H, W)
    else:
        part = results[0]
        filt = None
    total = jnp.sum(part[:, 0, 0]) if accumulate_h else jnp.sum(part[:, :, 0, 0])
    loss = total / (BC * H * W)
    return filt, loss


# TODO(synk): when avg=True the 2x2 avg-pool stays in plain JAX; folding it into
# the conv kernel's input path (read 2*T_H rows, pool in-kernel) would save a
# full HBM round trip of the pooled image.
def avg_pool2d_2x2(x):
    B, C, H, W = x.shape
    x = x[:, :, : (H // 2) * 2, : (W // 2) * 2]
    return x.reshape(B, C, H // 2, 2, W // 2, 2).mean(axis=(3, 5))


# -----------------------------------------------------------------------------
# JAX/Pallas port of the PyTorch module.
# -----------------------------------------------------------------------------
class LapLossRGB:
    """forward() returns syn_image unchanged; the filtered syn image and the MSE
    loss vs the precomputed target filter are stored in .syn_filter / .loss."""

    def __init__(self, image_target, filter_weight, rgb=True, device=None,
                 avg=False, store_syn_filter=True):
        del device  # no-op in JAX
        self.rgb = rgb
        self.avg = avg
        self.store_syn_filter = store_syn_filter
        filter_weight = np.asarray(filter_weight, dtype=np.float32)
        assert filter_weight.shape == (3, 3), "only 3x3 filters supported"
        self.weight_in = filter_weight
        self.weight = filter_weight
        self.pad = (filter_weight.shape[1] - 1) // 2
        self.syn_filter = None
        self.loss = None
        self.update(image_target)

    def _select(self, image):
        return image[:, 0:3, :, :] if self.rgb else image

    def filter_image(self, image_tensor):
        return lap_conv(self._select(image_tensor), self.weight)

    def forward(self, syn_image):
        syn = avg_pool2d_2x2(syn_image) if self.avg else syn_image
        self.syn_filter, self.loss = lap_conv_mse(
            self._select(syn), self.target_filter, self.weight,
            write_filter=self.store_syn_filter)
        return syn_image

    __call__ = forward

    def update(self, image_target):
        self.repeat = 3 if self.rgb else image_target.shape[1]
        target = self._select(image_target)
        if self.avg:
            target = avg_pool2d_2x2(target)
        self.target = target
        self.target_filter = self.filter_image(target)


# -----------------------------------------------------------------------------
# Plain-JAX references for correctness checks.
# -----------------------------------------------------------------------------
def _ref_depthwise(x, w3x3):
    C = x.shape[1]
    k = jnp.broadcast_to(jnp.asarray(w3x3, jnp.float32)[None, None], (C, 1, 3, 3))
    return lax.conv_general_dilated(
        x.astype(jnp.float32), k, window_strides=(1, 1),
        padding=((1, 1), (1, 1)), feature_group_count=C,
        dimension_numbers=("NCHW", "OIHW", "NCHW"))


if __name__ == "__main__":
    key = jax.random.PRNGKey(0)
    k_t, k_s, k_r, k_rt = jax.random.split(key, 4)
    B, C, H, W = 2, 4, 16, 16  # 4 channels to exercise the rgb channel slicing
    image_target = jax.random.uniform(k_t, (B, C, H, W), jnp.float32)
    syn_image = jax.random.uniform(k_s, (B, C, H, W), jnp.float32)

    module = LapLossRGB(image_target, LAP_WEIGHT, rgb=True, avg=False)
    out = module(syn_image)
    jax.block_until_ready(out)
    jax.block_until_ready(module.syn_filter)
    loss = jax.block_until_ready(module.loss)

    ref_syn_filter = _ref_depthwise(syn_image[:, :3], LAP_WEIGHT)
    ref_tgt_filter = _ref_depthwise(image_target[:, :3], LAP_WEIGHT)
    ref_loss = jnp.mean((ref_syn_filter - ref_tgt_filter) ** 2)

    assert out.shape == syn_image.shape
    assert np.allclose(np.asarray(out), np.asarray(syn_image))
    assert module.syn_filter.shape == (B, 3, H, W)
    assert np.allclose(np.asarray(module.target_filter), np.asarray(ref_tgt_filter),
                       rtol=1e-5, atol=1e-5)
    assert np.allclose(np.asarray(module.syn_filter), np.asarray(ref_syn_filter),
                       rtol=1e-5, atol=1e-5)
    assert np.allclose(np.asarray(loss), np.asarray(ref_loss), rtol=1e-5, atol=1e-5)

    # Loss-only variant (no syn_filter HBM writeback).
    filt_none, loss_only = lap_conv_mse(syn_image[:, :3], module.target_filter,
                                        LAP_WEIGHT, write_filter=False)
    assert filt_none is None
    assert np.allclose(np.asarray(loss_only), np.asarray(ref_loss), rtol=1e-5, atol=1e-5)

    # H-tiled halo path (n_h > 1), per-step partials (B*C < 8, both axes parallel).
    got_tiled = lap_conv(syn_image[:, :3], LAP_WEIGHT, row_tile=8)
    assert np.allclose(np.asarray(got_tiled), np.asarray(ref_syn_filter),
                       rtol=1e-5, atol=1e-5)
    filt_t, loss_t = lap_conv_mse(syn_image[:, :3], module.target_filter,
                                  LAP_WEIGHT, row_tile=8)
    assert np.allclose(np.asarray(filt_t), np.asarray(ref_syn_filter), rtol=1e-5, atol=1e-5)
    assert np.allclose(np.asarray(loss_t), np.asarray(ref_loss), rtol=1e-5, atol=1e-5)

    # Resident-accumulator partial path (B*C >= 8, h axis 'arbitrary').
    tf4 = _ref_depthwise(image_target, LAP_WEIGHT)
    ref4 = _ref_depthwise(syn_image, LAP_WEIGHT)
    filt4, loss4 = lap_conv_mse(syn_image, tf4, LAP_WEIGHT, row_tile=8)
    assert np.allclose(np.asarray(filt4), np.asarray(ref4), rtol=1e-5, atol=1e-5)
    assert np.allclose(np.asarray(loss4), np.asarray(jnp.mean((ref4 - tf4) ** 2)),
                       rtol=1e-5, atol=1e-5)

    # Ragged H (cdiv grid, masked partial last tile) + auto tile pick for small B*C.
    x_r = jax.random.uniform(k_r, (1, 3, 20, 16), jnp.float32)
    t_r = jax.random.uniform(k_rt, (1, 3, 20, 16), jnp.float32)
    tf_r = _ref_depthwise(t_r, LAP_WEIGHT)
    ref_r = _ref_depthwise(x_r, LAP_WEIGHT)
    got_r = lap_conv(x_r, LAP_WEIGHT, row_tile=8)
    assert np.allclose(np.asarray(got_r), np.asarray(ref_r), rtol=1e-5, atol=1e-5)
    filt_r, loss_r = lap_conv_mse(x_r, tf_r, LAP_WEIGHT)  # auto: T_H=8, n_h=3 (ragged)
    assert np.allclose(np.asarray(filt_r), np.asarray(ref_r), rtol=1e-5, atol=1e-5)
    assert np.allclose(np.asarray(loss_r), np.asarray(jnp.mean((ref_r - tf_r) ** 2)),
                       rtol=1e-5, atol=1e-5)

    # General (non-uniform-ring) 3x3 path.
    sobel = np.array([[-1., 0., 1.], [-2., 0., 2.], [-1., 0., 1.]], np.float32)
    got_sobel = lap_conv(syn_image[:, :3], sobel)
    assert np.allclose(np.asarray(got_sobel),
                       np.asarray(_ref_depthwise(syn_image[:, :3], sobel)),
                       rtol=1e-5, atol=1e-5)

    print("KERNEL_OK")
</pallas_src>

<mosaic_0001>
module attributes {stable_mosaic.version = 11 : i64} {
  func.func @kernel(%arg0: i32, %arg1: i32, %arg2: memref<1x16x16xf32, #tpu.memory_space<vmem>>, %arg3: memref<1x16x16xf32, #tpu.memory_space<vmem>>) attributes {dimension_semantics = [#tpu.dimension_semantics<parallel>, #tpu.dimension_semantics<parallel>], iteration_bounds = array<i64: 6, 1>, scalar_prefetch = 0 : i64, scratch_operands = 0 : i64, tpu.core_type = #tpu.core_type<tc>, window_params = [{transform_indices = @transform_0, window_bounds = array<i64: 1, 16, 16>}, {transform_indices = @transform_1, window_bounds = array<i64: 1, 16, 16>}]} {
    %c0 = arith.constant 0 : index
    %c0_0 = arith.constant 0 : index
    %c0_1 = arith.constant 0 : index
    %0 = vector.load %arg2[%c0, %c0_0, %c0_1] : memref<1x16x16xf32, #tpu.memory_space<vmem>>, vector<1x16x16xf32>
    %1 = vector.shape_cast %0 : vector<1x16x16xf32> to vector<16x16xf32>
    %cst = arith.constant 0.000000e+00 : f32
    %2 = vector.broadcast %cst : f32 to vector<1x16xf32>
    %cst_2 = arith.constant 0.000000e+00 : f32
    %3 = vector.broadcast %cst_2 : f32 to vector<16x1xf32>
    %4 = vector.extract_strided_slice %1 {offsets = [0, 0], sizes = [16, 15], strides = [1, 1]} : vector<16x16xf32> to vector<16x15xf32>
    %5 = tpu.concatenate %3, %4 in 1 : vector<16x1xf32>, vector<16x15xf32> -> vector<16x16xf32>
    %6 = arith.addf %1, %5 : vector<16x16xf32>
    %7 = vector.extract_strided_slice %1 {offsets = [0, 1], sizes = [16, 15], strides = [1, 1]} : vector<16x16xf32> to vector<16x15xf32>
    %8 = tpu.concatenate %7, %3 in 1 : vector<16x15xf32>, vector<16x1xf32> -> vector<16x16xf32>
    %9 = arith.addf %6, %8 : vector<16x16xf32>
    %cst_3 = arith.constant 0.000000e+00 : f32
    %10 = vector.broadcast %cst_3 : f32 to vector<1x1xf32>
    %11 = vector.extract_strided_slice %2 {offsets = [0, 0], sizes = [1, 15], strides = [1, 1]} : vector<1x16xf32> to vector<1x15xf32>
    %12 = tpu.concatenate %10, %11 in 1 : vector<1x1xf32>, vector<1x15xf32> -> vector<1x16xf32>
    %13 = arith.addf %2, %12 : vector<1x16xf32>
    %14 = vector.extract_strided_slice %2 {offsets = [0, 1], sizes = [1, 15], strides = [1, 1]} : vector<1x16xf32> to vector<1x15xf32>
    %15 = tpu.concatenate %14, %10 in 1 : vector<1x15xf32>, vector<1x1xf32> -> vector<1x16xf32>
    %16 = arith.addf %13, %15 : vector<1x16xf32>
    %cst_4 = arith.constant 0.000000e+00 : f32
    %17 = vector.broadcast %cst_4 : f32 to vector<1x1xf32>
    %18 = vector.extract_strided_slice %2 {offsets = [0, 0], sizes = [1, 15], strides = [1, 1]} : vector<1x16xf32> to vector<1x15xf32>
    %19 = tpu.concatenate %17, %18 in 1 : vector<1x1xf32>, vector<1x15xf32> -> vector<1x16xf32>
    %20 = arith.addf %2, %19 : vector<1x16xf32>
    %21 = vector.extract_strided_slice %2 {offsets = [0, 1], sizes = [1, 15], strides = [1, 1]} : vector<1x16xf32> to vector<1x15xf32>
    %22 = tpu.concatenate %21, %17 in 1 : vector<1x15xf32>, vector<1x1xf32> -> vector<1x16xf32>
    %23 = arith.addf %20, %22 : vector<1x16xf32>
    %24 = vector.extract_strided_slice %9 {offsets = [0, 0], sizes = [15, 16], strides = [1, 1]} : vector<16x16xf32> to vector<15x16xf32>
    %25 = tpu.concatenate %16, %24 in 0 : vector<1x16xf32>, vector<15x16xf32> -> vector<16x16xf32>
    %26 = vector.extract_strided_slice %9 {offsets = [1, 0], sizes = [15, 16], strides = [1, 1]} : vector<16x16xf32> to vector<15x16xf32>
    %27 = tpu.concatenate %26, %23 in 0 : vector<15x16xf32>, vector<1x16xf32> -> vector<16x16xf32>
    %28 = arith.addf %25, %9 : vector<16x16xf32>
    %29 = arith.addf %28, %27 : vector<16x16xf32>
    %cst_5 = arith.constant 5.000000e+00 : f32
    %30 = vector.broadcast %cst_5 : f32 to vector<16x16xf32>
    %31 = arith.mulf %30, %1 : vector<16x16xf32>
    %cst_6 = arith.constant -1.000000e+00 : f32
    %32 = vector.broadcast %cst_6 : f32 to vector<16x16xf32>
    %33 = arith.mulf %32, %29 : vector<16x16xf32>
    %34 = arith.addf %31, %33 : vector<16x16xf32>
    %c0_7 = arith.constant 0 : index
    %c0_8 = arith.constant 0 : index
    %c0_9 = arith.constant 0 : index
    %35 = vector.load %arg3[%c0_7, %c0_8, %c0_9] : memref<1x16x16xf32, #tpu.memory_space<vmem>>, vector<1x16x16xf32>
    %36 = vector.shape_cast %35 : vector<1x16x16xf32> to vector<16x16xf32>
    %37 = vector.shape_cast %34 : vector<16x16xf32> to vector<1x16x16xf32>
    tpu.vector_store %arg3[%c0_7, %c0_8, %c0_9], %37 {strides = array<i32>} : memref<1x16x16xf32, #tpu.memory_space<vmem>>, vector<1x16x16xf32>,
    return
  }
  func.func @transform_0(%arg0: i32, %arg1: i32) -> (i32, i32, i32) {
    %c0_i32 = arith.constant 0 : i32
    %c0_i32_0 = arith.constant 0 : i32
    return %arg0, %arg1, %c0_i32 : i32, i32, i32
  }
  func.func @transform_1(%arg0: i32, %arg1: i32) -> (i32, i32, i32) {
    %c0_i32 = arith.constant 0 : i32
    %c0_i32_0 = arith.constant 0 : i32
    return %arg0, %arg1, %c0_i32 : i32, i32, i32
  }
}

</mosaic_0001>

<bundles_post_ra>
// kernel: tpu_custom_call.1
= control target key start
LH: loop header
LB: loop body
LE: loop exit
PB: predicated region body
PF: predicated region fallthrough
CT: control target
= control target key end

     0   :  { %6 = vsyncpa [#allocation3], 0  ;;  %s679_s0 = inlined_call_operand.hbm [shape: f32[6,16,16], index: 0, kind: input, shape index: {}]   ;;  %s680_s1 = inlined_call_operand.hbm [shape: f32[6,16,16], index: 1, kind: output, shape index: {}]  }
   0x1   :  { %8 = vsyncpa [#allocation3 + $0x1], 0 }
   0x2   :  { %9 = vsyncpa [#allocation4], 0 }
   0x3   :  { %11 = vsyncpa [#allocation4 + $0x1], 0  ;;  %s531_s6 = smov 0   ;;  %s533_s7 = smov 0  }
   0x4   :  { %s535_s8 = smov 0   ;;  %s537_s9 = smov 0  }
   0x5   :  { %s539_s10 = smov 0   ;;  %s541_s11 = smov 0  }
   0x6 LB: > { %s316_s12 = sadd.s32 4294967295, %s510_s11   ;;  %s317_s13 = sadd.s32 4294967294, %s510_s11   ;;  %s510_s11 = sphi %s541_s11, %s17_s11   ;;  %s506_s10 = sphi %s539_s10, %s690_s10   ;;  %s502_s9 = sphi %s537_s9, %s689_s9   ;;  %s498_s8 = sphi %s535_s8, %s688_s8   ;;  %s494_s7 = sphi %s533_s7, %s687_s7   ;;  %s490_s6 = sphi %s531_s6, %s686_s6  }
   0x7   : > { %s29_s14 = sadd.s32 1, %s506_s10  ;;  %s38_s15 = sadd.s32 1, %s498_s8 }
   0x8   : > { %p31_p0 = scmp.ge.s32.totalorder %s29_s14, 6  ;;  %p45_p1 = scmp.ne.s32.totalorder %s498_s8, %s494_s7 }
   0x9   : > { %p46_p2 = scmp.eq.s32.totalorder %s510_s11, 0  ;;  %p51_p3 = scmp.ne.s32.totalorder %s494_s7, %s490_s6 }
   0xa   : > { %s692_s14 = smov (%p31_p0, %s29_s14), 0  ;;  %p52_p5 = scmp.eq.s32.totalorder %s316_s12, 0 }
   0xb   : > { %p572_p4 = por %p46_p2, %p45_p1  ;;  %s33_s17 = ssub.s32 %s506_s10, %s692_s14 }
   0xc   : > { %p77_p6 = scmp.eq.s32.totalorder %s316_s12, 5  ;;  %p36_p7 = scmp.eq.s32.totalorder %s33_s17, 0 }
   0xd   : > { %p578_p8 = por %p52_p5, %p51_p3  ;;  %p83_p10 = scmp.eq.s32.totalorder %s317_s13, 5 }
   0xe   : > { %p582_p9 = por %p77_p6, %p45_p1  ;;  %p345_p12 = scmp.lt.s32.totalorder %s510_s11, 6 }
   0xf   : > { %s587_s20 = scalar_select %p36_p7, %s498_s8, %s38_s15  }
  0x10   : > { %p589_p11 = por %p83_p10, %p51_p3  ;;  %s103_s22 = sand.u32 1, %s498_s8  }
  0x11   : > { %s320_s23 = sshll.u32 %s103_s22, 4  ;;  %s331_s24 = sshll.u32 %s506_s10, 8 }
  0x12   : > { %s115_s27 = scalar_lea.hbm %s679_s0, %s331_s24  ;;  %s107_s28 = scalar_lea.vmem [#allocation2], %s320_s23 }
  0x13   : > { %s116_s29 = sshll.u32 %s107_s28, 4  ;;  %p601_p13 = pnand %p345_p12, %p572_p4  ;;  %s117_s29 = int_to_ptr.vmem [resolvable:$true] %s116_s29 }
  0x14   : > { %p323_p0 = scmp.ge.s32.totalorder %s510_s11, 1  ;;  %s104_s2 = scalar_lea.sflag [#allocation3], %s103_s22 }
  0x15   : > { %p404_p1 = pneg %p601_p13  ;;  %s415_s3 = scalar_lea.vmem %s117_s29, 256 }
  0x16   : > { %p416_p2 = scmp.ne.s32.totalorder %s117_s29, %s415_s3  ;;  %s512_s4 = smov [#allocation2]  }
  0x17   : > { %s420_s5 = sshll.u32 %s512_s4, 4  ;;  %s421_s5 = int_to_ptr.vmem [resolvable:$false] %s420_s5 }
  0x18   : > { %p418_p3 = pnand %p416_p2, %p404_p1  ;;  %s422_s12 = scalar_lea.vmem %s421_s5, 512 }
  0x19   : > { %p423_p6 = scmp.lt.s32.totalorder %s117_s29, %s421_s5  ;;  %p424_p7 = scmp.lt.s32.totalorder %s422_s12, %s415_s3 }
  0x1a   : > { %p419_p5 = pneg %p418_p3 }
  0x1b   : > { %p425_p10 = por %p424_p7, %p423_p6 }
  0x1d   : > { %p426_p4 = pnand %p425_p10, %p419_p5 }
  0x1f   : > { %429 = shalt.err (!%p426_p4)
}
  0x20   : > { %s513_s13 = smov 128   ;;  %s514_s15 = smov 8  }
  0x21   : > { %340 = dma.hbm_to_vmem [thread:$0]  (!%p601_p13), %s115_s27, 256, %s117_s29, %s104_s2, %s513_s13, %s513_s13, %s514_s15  }
  0x22   : > { %p124_p12 = scmp.lt.s32.totalorder %s510_s11, 7 }
  0x24   : > { %p125_p1 = pnand %p323_p0, %p124_p12 }
  0x25   : > { %s614_s16 = sand.u32 (!%p125_p1), 1, %s494_s7  }
  0x26   : > { %128 = sbr.rel (%p125_p1) target bundleno = 194 (0xc2), region = 24  ;;  %s324_s17 = sshll.u32 (!%p125_p1), %s614_s16, 4 }
  0x27   : > { %s131_s22 = scalar_lea.sflag (!%p125_p1), [#allocation3], %s614_s16  ;;  %s134_s23 = scalar_lea.vmem (!%p125_p1), [#allocation2], %s324_s17 }
  0x2b   : > { %481 = dma.done.wait (%p578_p8), %s131_s22, 256  }
  0x2c   : > { %483 = vsyncadd (%p578_p8), %s131_s22, 4294967040  ;;  %v155_v0 = vld [vmem:[%s134_s23] sm:$0xff]  ;;  %s515_s24 = smov 1   ;;  %s516_s25 = smov 127   ;;  %v156_v1 = vld [vmem:[%s134_s23 + $0x8] sm:$0xff]  ;;  %vm165_vm0 = vcmask 7168  }
  0x2d   : > { %159 = vrot.lane.b32.xlu0 %v155_v0, %s515_s24  ;;  %170 = vrot.lane.b32.xlu1 %v155_v0, %s516_s25  ;;  %vm176_vm1 = vcmask 121856   ;;  %vm183_vm2 = vcmask 1040384   ;;  %vm190_vm3 = vcmask 1046528   ;;  %v517_v17 = vmov 0.0   ;;  %s332_s18 = sshll.u32 %s502_s9, 8  ;;  %s152_s26 = scalar_lea.vmem [#allocation5], %s324_s17 }
  0x2e   : > { %v197_v18 = vrot.slane %v517_v17, 1  ;;  %v204_v24 = vmul.f32 5.0, %v155_v0  ;;  %v205_v28 = vmul.f32 5.0, %v156_v1  ;;  %s229_s27 = sshll.u32 %s152_s26, 4  ;;  %vm210_vm4 = vcmask 130048   ;;  %s630_s30 = scalar_lea.hbm %s680_s1, %s332_s18  ;;  %s632_s27 = int_to_ptr.vmem [resolvable:$true] %s229_s27 }
  0x2f   : > { %s214_s9 = scalar_lea.sflag [#allocation4], %s614_s16  ;;  %s430_s2 = scalar_lea.vmem %s632_s27, 256 }
  0x30   : > { %p431_p8 = scmp.ne.s32.totalorder %s632_s27, %s430_s2  ;;  %s518_s3 = smov [#allocation5]  }
  0x31   : > { %161 = vrot.lane.b32.xlu0 %v156_v1, %s515_s24  ;;  %172 = vrot.lane.b32.xlu1 %v156_v1, %s516_s25  ;;  %s434_s4 = sshll.u32 %s518_s3, 4  ;;  %s435_s4 = int_to_ptr.vmem [resolvable:$false] %s434_s4 }
  0x32   : > { %p432_p13 = pnand %p431_p8, %p582_p9  ;;  %s436_s5 = scalar_lea.vmem %s435_s4, 512 }
  0x33   : > { %p437_p2 = scmp.lt.s32.totalorder %s632_s27, %s435_s4  ;;  %p438_p3 = scmp.lt.s32.totalorder %s436_s5, %s430_s2 }
  0x34   : > { %p433_p0 = pneg %p432_p13 }
  0x35   : > { %p439_p5 = por %p438_p3, %p437_p2 }
  0x37   : > { %p440_p6 = pnand %p439_p5, %p433_p0 }
  0x9f   : > { %v160_v2 = vpop.permute.xlu0 %159  ;;  %v171_v3 = vpop.permute.xlu1 %170 }
  0xa0   : > { %v166_v4 = vsel %vm165_vm0, 0.0, %v160_v2  ;;  %v177_v5 = vsel %vm176_vm1, %v171_v3, 0.0 }
  0xa1   : > { %v168_v6 = vadd.f32 %v166_v4, %v155_v0 }
  0xa3   : > { %v179_v7 = vadd.f32 %v177_v5, %v168_v6  ;;  %v162_v8 = vpop.permute.xlu0 %161  ;;  %v173_v9 = vpop.permute.xlu1 %172 }
  0xa4   : > { %v167_v10 = vsel %vm165_vm0, 0.0, %v162_v8  ;;  %v178_v11 = vsel %vm176_vm1, %v173_v9, 0.0 }
  0xa5   : > { %v184_v12 = vrot.slane %v179_v7, 7  ;;  %v169_v13 = vadd.f32 %v167_v10, %v156_v1  ;;  %v191_v16 = vrot.slane %v179_v7, 1 }
  0xa7   : > { %v189_v14 = vsel %vm183_vm2, 0.0, %v184_v12  ;;  %v180_v15 = vadd.f32 %v178_v11, %v169_v13 }
  0xa8   : > { %v200_v21 = vadd.f32 %v189_v14, %v179_v7 }
  0xa9   : > { %v185_v19 = vrot.slane %v180_v15, 7  ;;  %v192_v20 = vrot.slane %v180_v15, 1 }
  0xab   : > { %v186_v22 = vsel %vm183_vm2, %v184_v12, %v185_v19  ;;  %v193_v23 = vsel %vm190_vm3, %v191_v16, %v192_v20  ;;  %v199_v27 = vsel %vm190_vm3, %v192_v20, %v197_v18 }
  0xac   : > { %v201_v25 = vadd.f32 %v186_v22, %v180_v15  ;;  %v202_v26 = vadd.f32 %v200_v21, %v193_v23 }
  0xae   : > { %v203_v29 = vadd.f32 %v201_v25, %v199_v27  ;;  %v206_v30 = vmul.f32 -1.0, %v202_v26 }
  0xb0   : > { %v207_v31 = vmul.f32 -1.0, %v203_v29  ;;  %v208_v32 = vadd.f32 %v206_v30, %v204_v24 }
  0xb2   : > { %v209_v33 = vadd.f32 %v207_v31, %v205_v28  ;;  %211 = vst.msk [vmem:[%s152_s26] sm:$0xff] %vm210_vm4, %v208_v32 }
  0xb4   : > { %212 = vst.msk [vmem:[%s152_s26 + $0x8] sm:$0xff] %vm210_vm4, %v209_v33 }
  0xb5   : > { %443 = shalt.err (!%p440_p6)
}
  0xb6   : > { %s444_s12 = scalar_lea.hbm %s630_s30, 256  ;;  %s448_s17 = scalar_lea.hbm %s680_s1, 1536 }
  0xb7   : > { %p445_p7 = scmp.ne.s32.totalorder %s630_s30, %s444_s12  ;;  %p449_p12 = scmp.lt.s32.totalorder %s630_s30, %s680_s1 }
  0xb8   : > { %p450_p1 = scmp.lt.s32.totalorder %s448_s17, %s444_s12 }
  0xb9   : > { %p446_p10 = pnand %p445_p7, %p582_p9 }
  0xba   : > { %p451_p8 = por %p450_p1, %p449_p12 }
  0xbb   : > { %p447_p4 = pneg %p446_p10 }
  0xbd   : > { %p452_p13 = pnand %p451_p8, %p447_p4 }
  0xbf   : > { %455 = shalt.err (!%p452_p13)
}
  0xc0   : > { %s519_s24 = smov 128   ;;  %s520_s25 = smov 8  }
  0xc1   : > { %335 = dma.vmem_to_hbm [thread:$0]  (%p582_p9), %s632_s27, 256, %s630_s30, %s214_s9, %s519_s24, %s519_s24, %s520_s25  }
  0xc2 PF: > { %p346_p0 = scmp.ge.s32.totalorder %s510_s11, 2  ;;  %s244_s18 = sand.u32 1, %s490_s6  }
  0xc3   : > { %s245_s26 = scalar_lea.sflag [#allocation4], %s244_s18 }
  0xc4   : > { %p342_p2 = pnand %p346_p0, %p589_p11 }
  0xc6   : > { %p343_p3 = pneg %p342_p2 }
  0xc8   : > { %485 = dma.done.wait (%p343_p3), %s245_s26, 256  }
  0xc9   : > { %487 = vsyncadd (%p343_p3), %s245_s26, 4294967040  ;;  %s17_s11 = sadd.s32 1, %s510_s11   ;;  %s686_s6 = smov %s494_s7 }
  0xca   : > { %p14_p5 = scmp.ge.s32.totalorder %s17_s11, 8   ;;  %s687_s7 = smov %s498_s8 }
  0xcb   : > { %s688_s8 = smov %s587_s20  ;;  %s689_s9 = smov %s506_s10 }
  0xcc   : > { %s690_s10 = smov %s692_s14  ;;  %16 = sbr.rel (!%p14_p5) target bundleno = 6 (0x6), region = 69 }
  0xd1   :  { %250 = vsyncpa [#allocation3], 1 }
  0xd2   :  { %252 = vsyncpa [#allocation3 + $0x1], 1 }
  0xd3   :  { %253 = vsyncpa [#allocation4], 1 }
  0xd4   :  { %255 = vsyncpa [#allocation4 + $0x1], 1 }

</bundles_post_ra>
